<compile_context>
chip_gen: v5e
topology: v5e:2x2
jax: 0.10.0
libtpu: 0.0.40
codegen_flags: <defaults>
</compile_context>

<pallas_src>
import jax
import jax.numpy as jnp
from jax.experimental import pallas as pl
from jax.experimental.pallas import tpu as pltpu


def _make_shuffle_kernel(N, g):
    """Kernel: min(g, N) large slab DMAs implementing the channel shuffle.

    x_hbm has logical shape (b, N, g, L); y_hbm has (b, g, N, L).
    Mapping: y[bi, gi, ni, :] = x[bi, ni, gi, :].
    """
    loop_over_groups = g <= N  # choose the axis giving the FEWEST descriptors

    def kernel(x_hbm, y_hbm, sem):
        if loop_over_groups:
            # g DMAs: each moves the full (b, N, L) slab of one group.
            #   src: strided rectangular block (g axis fixed at gi)
            #   dst: (b, N*L)-contiguous per batch element
            def copy(gi):
                return pltpu.make_async_copy(
                    x_hbm.at[:, :, gi, :],   # (b, N, L)
                    y_hbm.at[:, gi, :, :],   # (b, N, L)
                    sem.at[gi],
                )

            n_copies = g
        else:
            # N DMAs: each moves the full (b, g, L) slab of one N-index.
            #   src: (b, g*L)-contiguous per batch element
            #   dst: strided rectangular block (N axis fixed at ni)
            def copy(ni):
                return pltpu.make_async_copy(
                    x_hbm.at[:, ni, :, :],   # (b, g, L)
                    y_hbm.at[:, :, ni, :],   # (b, g, L)
                    sem.at[ni],
                )

            n_copies = N

        # Fully unrolled: issue ALL slab DMAs before ANY wait so every
        # transfer is in flight concurrently (no intermediate barriers).
        for i in range(n_copies):
            copy(i).start()
        for i in range(n_copies):
            copy(i).wait()

    return kernel


def shuffle_block(x, groups=4):
    """Pallas implementation of ShuffleBlock.forward for 5-D input (b, N, C, H, W)."""
    b, N, C, H, W = x.shape
    g = groups
    assert C % g == 0, "C must be divisible by groups"
    Cg = C // g
    L = Cg * H * W          # length of one contiguous shuffled chunk

    # Identity-permutation fast path: nothing moves, skip the kernel entirely.
    if g == 1 or N == 1:
        return x

    n_dmas = min(g, N)      # coalesced descriptor count (and semaphore count)

    # Free reinterpret: chunk (bi, ni, gi) is contiguous of length L.
    x4 = x.reshape(b, N, g, L)

    y4 = pl.pallas_call(
        _make_shuffle_kernel(N, g),
        out_shape=jax.ShapeDtypeStruct((b, g, N, L), x.dtype),
        # Raw HBM refs on both sides: the kernel does direct HBM->HBM DMAs.
        in_specs=[pl.BlockSpec(memory_space=pl.ANY)],
        out_specs=pl.BlockSpec(memory_space=pl.ANY),
        scratch_shapes=[pltpu.SemaphoreType.DMA((n_dmas,))],
        compiler_params=pltpu.CompilerParams(has_side_effects=True),
        # Pure memory traffic: read + write every element exactly once.
        cost_estimate=pl.CostEstimate(
            flops=0,
            transcendentals=0,
            bytes_accessed=2 * x.size * x.dtype.itemsize,
        ),
    )(x4)

    # Free reinterpret: (b, g, N, L) flat order == PyTorch output's flat order.
    return y4.reshape(b, N, C, H, W)


def shuffle_block_ref(x, groups=4):
    """Pure-JAX reference mirroring the PyTorch code exactly."""
    b, N, C, H, W = x.shape
    g = groups
    return (
        x.reshape(b, N, g, C // g, H, W)
        .transpose(0, 2, 1, 3, 4, 5)
        .reshape(b, N, C, H, W)
    )


if __name__ == "__main__":
    key = jax.random.PRNGKey(0)
    # Small 5-D shapes consistent with the forward: (b, N, C, H, W), groups=4.
    b, N, C, H, W = 2, 2, 8, 16, 16
    groups = 4
    x = jax.random.normal(key, (b, N, C, H, W), dtype=jnp.float32)

    out = jax.block_until_ready(shuffle_block(x, groups=groups))
    ref = shuffle_block_ref(x, groups=groups)

    assert out.shape == ref.shape and out.dtype == ref.dtype
    assert bool(jnp.array_equal(out, ref)), "Pallas shuffle does not match reference"

    # Also exercise the identity fast path (g == 1).
    out_id = jax.block_until_ready(shuffle_block(x, groups=1))
    assert bool(jnp.array_equal(out_id, shuffle_block_ref(x, groups=1)))

    print("KERNEL_OK")
</pallas_src>

<mosaic_0001>
module attributes {stable_mosaic.version = 11 : i64} {
  func.func @kernel(%arg0: memref<2x2x4x512xf32, #tpu.memory_space<any>>, %arg1: memref<2x4x2x512xf32, #tpu.memory_space<any>>, %arg2: memref<2x!tpu.dma_semaphore, #tpu.memory_space<semaphore_mem>>) attributes {dimension_semantics = [], scalar_prefetch = 0 : i64, scratch_operands = 1 : i64, tpu.core_type = #tpu.core_type<tc>} {
    %c0_i32 = arith.constant 0 : i32
    %c0_i32_0 = arith.constant 0 : i32
    %c0_i32_1 = arith.constant 0 : i32
    %c0_i32_2 = arith.constant 0 : i32
    %c0_i32_3 = arith.constant 0 : i32
    %c0_i32_4 = arith.constant 0 : i32
    %0 = tpu.memref_slice %arg0[%c0_i32_2, %c0_i32, %c0_i32_3, %c0_i32_4] : memref<2x2x4x512xf32, #tpu.memory_space<any>> -> memref<2x1x4x512xf32, #tpu.memory_space<any>>
    %1 = tpu.memref_squeeze %0 : memref<2x1x4x512xf32, #tpu.memory_space<any>> -> memref<2x4x512xf32, #tpu.memory_space<any>>
    %c0_i32_5 = arith.constant 0 : i32
    %c0_i32_6 = arith.constant 0 : i32
    %c0_i32_7 = arith.constant 0 : i32
    %2 = tpu.memref_slice %arg1[%c0_i32_5, %c0_i32_6, %c0_i32_0, %c0_i32_7] : memref<2x4x2x512xf32, #tpu.memory_space<any>> -> memref<2x4x1x512xf32, #tpu.memory_space<any>>
    %3 = tpu.memref_squeeze %2 : memref<2x4x1x512xf32, #tpu.memory_space<any>> -> memref<2x4x512xf32, #tpu.memory_space<any>>
    %4 = tpu.memref_slice %arg2[%c0_i32_1] : memref<2x!tpu.dma_semaphore, #tpu.memory_space<semaphore_mem>> -> memref<1x!tpu.dma_semaphore, #tpu.memory_space<semaphore_mem>>
    %5 = tpu.memref_squeeze %4 : memref<1x!tpu.dma_semaphore, #tpu.memory_space<semaphore_mem>> -> memref<!tpu.dma_semaphore, #tpu.memory_space<semaphore_mem>>
    tpu.enqueue_dma source(%1 : memref<2x4x512xf32, #tpu.memory_space<any>>) target(%3 : memref<2x4x512xf32, #tpu.memory_space<any>>) target_semaphore(%5 : memref<!tpu.dma_semaphore, #tpu.memory_space<semaphore_mem>>)
    %c1_i32 = arith.constant 1 : i32
    %c1_i32_8 = arith.constant 1 : i32
    %c1_i32_9 = arith.constant 1 : i32
    %c0_i32_10 = arith.constant 0 : i32
    %c0_i32_11 = arith.constant 0 : i32
    %c0_i32_12 = arith.constant 0 : i32
    %6 = tpu.memref_slice %arg0[%c0_i32_10, %c1_i32, %c0_i32_11, %c0_i32_12] : memref<2x2x4x512xf32, #tpu.memory_space<any>> -> memref<2x1x4x512xf32, #tpu.memory_space<any>>
    %7 = tpu.memref_squeeze %6 : memref<2x1x4x512xf32, #tpu.memory_space<any>> -> memref<2x4x512xf32, #tpu.memory_space<any>>
    %c0_i32_13 = arith.constant 0 : i32
    %c0_i32_14 = arith.constant 0 : i32
    %c0_i32_15 = arith.constant 0 : i32
    %8 = tpu.memref_slice %arg1[%c0_i32_13, %c0_i32_14, %c1_i32_8, %c0_i32_15] : memref<2x4x2x512xf32, #tpu.memory_space<any>> -> memref<2x4x1x512xf32, #tpu.memory_space<any>>
    %9 = tpu.memref_squeeze %8 : memref<2x4x1x512xf32, #tpu.memory_space<any>> -> memref<2x4x512xf32, #tpu.memory_space<any>>
    %10 = tpu.memref_slice %arg2[%c1_i32_9] : memref<2x!tpu.dma_semaphore, #tpu.memory_space<semaphore_mem>> -> memref<1x!tpu.dma_semaphore, #tpu.memory_space<semaphore_mem>>
    %11 = tpu.memref_squeeze %10 : memref<1x!tpu.dma_semaphore, #tpu.memory_space<semaphore_mem>> -> memref<!tpu.dma_semaphore, #tpu.memory_space<semaphore_mem>>
    tpu.enqueue_dma source(%7 : memref<2x4x512xf32, #tpu.memory_space<any>>) target(%9 : memref<2x4x512xf32, #tpu.memory_space<any>>) target_semaphore(%11 : memref<!tpu.dma_semaphore, #tpu.memory_space<semaphore_mem>>)
    %c0_i32_16 = arith.constant 0 : i32
    %c0_i32_17 = arith.constant 0 : i32
    %c0_i32_18 = arith.constant 0 : i32
    %c0_i32_19 = arith.constant 0 : i32
    %c0_i32_20 = arith.constant 0 : i32
    %c0_i32_21 = arith.constant 0 : i32
    %12 = tpu.memref_slice %arg0[%c0_i32_19, %c0_i32_16, %c0_i32_20, %c0_i32_21] : memref<2x2x4x512xf32, #tpu.memory_space<any>> -> memref<2x1x4x512xf32, #tpu.memory_space<any>>
    %13 = tpu.memref_squeeze %12 : memref<2x1x4x512xf32, #tpu.memory_space<any>> -> memref<2x4x512xf32, #tpu.memory_space<any>>
    %c0_i32_22 = arith.constant 0 : i32
    %c0_i32_23 = arith.constant 0 : i32
    %c0_i32_24 = arith.constant 0 : i32
    %14 = tpu.memref_slice %arg1[%c0_i32_22, %c0_i32_23, %c0_i32_17, %c0_i32_24] : memref<2x4x2x512xf32, #tpu.memory_space<any>> -> memref<2x4x1x512xf32, #tpu.memory_space<any>>
    %15 = tpu.memref_squeeze %14 : memref<2x4x1x512xf32, #tpu.memory_space<any>> -> memref<2x4x512xf32, #tpu.memory_space<any>>
    %16 = tpu.memref_slice %arg2[%c0_i32_18] : memref<2x!tpu.dma_semaphore, #tpu.memory_space<semaphore_mem>> -> memref<1x!tpu.dma_semaphore, #tpu.memory_space<semaphore_mem>>
    %17 = tpu.memref_squeeze %16 : memref<1x!tpu.dma_semaphore, #tpu.memory_space<semaphore_mem>> -> memref<!tpu.dma_semaphore, #tpu.memory_space<semaphore_mem>>
    tpu.wait_dma2 semaphore(%17 : memref<!tpu.dma_semaphore, #tpu.memory_space<semaphore_mem>>) src(%13 : memref<2x4x512xf32, #tpu.memory_space<any>>) dst(%15 : memref<2x4x512xf32, #tpu.memory_space<any>>)
    %c1_i32_25 = arith.constant 1 : i32
    %c1_i32_26 = arith.constant 1 : i32
    %c1_i32_27 = arith.constant 1 : i32
    %c0_i32_28 = arith.constant 0 : i32
    %c0_i32_29 = arith.constant 0 : i32
    %c0_i32_30 = arith.constant 0 : i32
    %18 = tpu.memref_slice %arg0[%c0_i32_28, %c1_i32_25, %c0_i32_29, %c0_i32_30] : memref<2x2x4x512xf32, #tpu.memory_space<any>> -> memref<2x1x4x512xf32, #tpu.memory_space<any>>
    %19 = tpu.memref_squeeze %18 : memref<2x1x4x512xf32, #tpu.memory_space<any>> -> memref<2x4x512xf32, #tpu.memory_space<any>>
    %c0_i32_31 = arith.constant 0 : i32
    %c0_i32_32 = arith.constant 0 : i32
    %c0_i32_33 = arith.constant 0 : i32
    %20 = tpu.memref_slice %arg1[%c0_i32_31, %c0_i32_32, %c1_i32_26, %c0_i32_33] : memref<2x4x2x512xf32, #tpu.memory_space<any>> -> memref<2x4x1x512xf32, #tpu.memory_space<any>>
    %21 = tpu.memref_squeeze %20 : memref<2x4x1x512xf32, #tpu.memory_space<any>> -> memref<2x4x512xf32, #tpu.memory_space<any>>
    %22 = tpu.memref_slice %arg2[%c1_i32_27] : memref<2x!tpu.dma_semaphore, #tpu.memory_space<semaphore_mem>> -> memref<1x!tpu.dma_semaphore, #tpu.memory_space<semaphore_mem>>
    %23 = tpu.memref_squeeze %22 : memref<1x!tpu.dma_semaphore, #tpu.memory_space<semaphore_mem>> -> memref<!tpu.dma_semaphore, #tpu.memory_space<semaphore_mem>>
    tpu.wait_dma2 semaphore(%23 : memref<!tpu.dma_semaphore, #tpu.memory_space<semaphore_mem>>) src(%19 : memref<2x4x512xf32, #tpu.memory_space<any>>) dst(%21 : memref<2x4x512xf32, #tpu.memory_space<any>>)
    return
  }
}

</mosaic_0001>

<bundles_post_ra>
// kernel: tpu_custom_call.1
= control target key start
LH: loop header
LB: loop body
LE: loop exit
PB: predicated region body
PF: predicated region fallthrough
CT: control target
= control target key end

     0   :  { %s114_s12 = smov 512   ;;  %s115_s13 = smov 4   ;;  %s148_s0 = inlined_call_operand.hbm [shape: f32[2,2,4,512], index: 0, kind: input, shape index: {}]   ;;  %s149_s1 = inlined_call_operand.hbm [shape: f32[2,4,2,512], index: 1, kind: output, shape index: {}]  }
   0x1   :  { %s10_s8 = sshll.u32 %s148_s0, 4  ;;  %s12_s11 = sshll.u32 %s149_s1, 4  ;;  %s11_s8 = int_to_ptr.hbm [resolvable:$true] %s10_s8  ;;  %s13_s11 = int_to_ptr.hbm [resolvable:$true] %s12_s11 }
   0x2   :  { %21 = sst [smem:[#allocation4]] %s114_s12  ;;  %s116_s14 = smov 64  }
   0x3   :  { %23 = sst [smem:[#allocation4 + $0x1]] %s114_s12  ;;  %s117_s15 = smov 32  }
   0x4   :  { %25 = sst [smem:[#allocation4 + $0x2]] %s115_s13  ;;  %s118_s16 = smov 16  }
   0x5   :  { %27 = sst [smem:[#allocation4 + $0x3]] %s116_s14  ;;  %s119_s17 = smov 128  }
   0x6   :  { %29 = sst [smem:[#allocation4 + $0x4]] %s117_s15  ;;  %s120_s18 = smov 1  }
   0x7   :  { %31 = sst [smem:[#allocation4 + $0x5]] %s115_s13  ;;  %s40_s21 = scalar_lea.hbm %s148_s0, 16 }
   0x8   :  { %33 = sst [smem:[#allocation4 + $0x6]] %s118_s16  ;;  %s121_s22 = smov [#allocation2]  }
   0x9   :  { %35 = sst [smem:[#allocation4 + $0x7]] %s119_s17  ;;  %s122_s23 = smov [#allocation3]  }
   0xa   :  { %37 = sst [smem:[#allocation4 + $0x8]] %s120_s18  ;;  %s123_s24 = smov 0  }
   0xb   :  { %39 = dma.general %s11_s8, 512, %s13_s11, %s121_s22, %s122_s23, [#allocation4], %s123_s24, 0  }
   0xc   :  { %58 = sst [smem:[#allocation6]] %s114_s12  ;;  %s41_s27 = scalar_lea.hbm %s149_s1, 1 }
   0xd   :  { %60 = sst [smem:[#allocation6 + $0x1]] %s114_s12  ;;  %s47_s28 = sshll.u32 %s40_s21, 4  ;;  %s48_s28 = int_to_ptr.hbm [resolvable:$true] %s47_s28 }
   0xe   :  { %62 = sst [smem:[#allocation6 + $0x2]] %s115_s13  ;;  %s49_s29 = sshll.u32 %s41_s27, 4  ;;  %s50_s29 = int_to_ptr.hbm [resolvable:$true] %s49_s29 }
   0xf   :  { %64 = sst [smem:[#allocation6 + $0x3]] %s116_s14  ;;  %s124_s0 = smov [#allocation2 + $0x1]  }
  0x10   :  { %66 = sst [smem:[#allocation6 + $0x4]] %s117_s15  ;;  %s125_s30 = smov [#allocation5]  }
  0x11   :  { %68 = sst [smem:[#allocation6 + $0x5]] %s115_s13 }
  0x12   :  { %70 = sst [smem:[#allocation6 + $0x6]] %s118_s16 }
  0x13   :  { %72 = sst [smem:[#allocation6 + $0x7]] %s119_s17 }
  0x14   :  { %74 = sst [smem:[#allocation6 + $0x8]] %s120_s18 }
  0x15   :  { %76 = dma.general %s48_s28, 512, %s50_s29, %s124_s0, %s125_s30, [#allocation6], %s123_s24, 0  }
  0x16   :  { %110 = dma.done.wait [#allocation2], 512 }
  0x17   :  { %111 = vsyncadd [#allocation2], 4294966784 }
  0x18   :  { %112 = dma.done.wait [#allocation2 + $0x1], 512 }
  0x19   :  { %113 = vsyncadd [#allocation2 + $0x1], 4294966784 }
  0x1a   :  { %83 = vsyncmov [#allocation2] }
  0x1d   :  { %s84_s1 = vpop.sfrf %83 }
  0x1e   :  { %p96_p0 = scmp.ne.s32.totalorder %s84_s1, 0 }
  0x20   :  { %88 = shalt.err (%p96_p0)  }
  0x21   :  { %90 = vsyncmov [#allocation2 + $0x1] }
  0x24   :  { %s91_s2 = vpop.sfrf %90 }
  0x25   :  { %p97_p1 = scmp.ne.s32.totalorder %s91_s2, 0 }
  0x27   :  { %95 = shalt.err (%p97_p1)  }

</bundles_post_ra>
